<compile_context>
chip_gen: v6e
topology: v6e:2x2x1
jax: 0.10.0
libtpu: 0.0.40
codegen_flags: <defaults>
</compile_context>

<pallas_src>
import jax
import jax.numpy as jnp
from jax.experimental import pallas as pl
from jax.experimental.pallas import tpu as pltpu

IN_FEATURES = 200
HIDDEN = 64
OUT_FEATURES = 2

# Max batch-tile rows.  x tile at 8192 rows (f32) = 6.25 MiB, double-buffered
# 12.5 MiB; transposed output buffers are ~0.5 MiB total -> < 14 MiB, well
# under the explicit 32 MiB scoped-VMEM limit on every generation.
MAX_TB = 8192
MIN_PALLAS_BATCH = 256  # below this, plain XLA is strictly faster


def fused_linear_kernel(x_ref, wt_ref, b_ref, ot_ref):
    # x_ref : (TB, 200) f32 VMEM  -- streamed over the batch
    # wt_ref: (2, 200)  f32 VMEM  -- resident fused weight (out, in)
    # b_ref : (2, 1)    f32 VMEM  -- resident fused bias (column)
    # ot_ref: (2, TB)   f32 VMEM  -- lane-dense transposed output
    yt = jax.lax.dot_general(
        wt_ref[...], x_ref[...],
        dimension_numbers=(((1,), (1,)), ((), ())),   # contract the 200-dim
        preferred_element_type=jnp.float32,
        precision=jax.lax.Precision.DEFAULT,
    )                                                 # (2, TB)
    ot_ref[...] = (yt + b_ref[...]).astype(ot_ref.dtype)


def _round_up(n, m):
    return ((n + m - 1) // m) * m


def mlp_forward(x, w1, b1, w2, b2):
    """x: (B, 200) f32; w1: (64, 200); b1: (64,); w2: (2, 64); b2: (2,)  (PyTorch layout)."""
    B = x.shape[0]

    # --- fold the two linear layers into one affine map (done once, tiny) ---
    wt_eff = (w2 @ w1).astype(jnp.float32)                     # (2, 200)  == W_eff.T
    b_eff = (w2 @ b1 + b2).astype(jnp.float32)                 # (2,)

    # Tiny batches: launch overhead dwarfs the work -> plain XLA path.
    if B < MIN_PALLAS_BATCH:
        return (x @ wt_eff.T + b_eff).astype(x.dtype)

    b_col = b_eff.reshape(OUT_FEATURES, 1)                     # (2, 1)

    # Batch tile: 128-aligned (lane-dense output constraint), capped at
    # ceil(B/2) so the grid always has >= 2 blocks (megacore), and at MAX_TB.
    tb = min(MAX_TB, _round_up(-(-B // 2), 128))
    grid = (pl.cdiv(B, tb),)                                   # ragged tail handled by Pallas

    cost = pl.CostEstimate(
        flops=2 * B * IN_FEATURES * OUT_FEATURES,
        transcendentals=0,
        bytes_accessed=4 * (B * IN_FEATURES + B * OUT_FEATURES
                            + IN_FEATURES * OUT_FEATURES + OUT_FEATURES),
    )

    out_t = pl.pallas_call(
        fused_linear_kernel,
        out_shape=jax.ShapeDtypeStruct((OUT_FEATURES, B), x.dtype),
        grid=grid,
        in_specs=[
            pl.BlockSpec((tb, IN_FEATURES), lambda i: (i, 0)),              # stream x over batch
            pl.BlockSpec((OUT_FEATURES, IN_FEATURES), lambda i: (0, 0)),    # resident fused weight
            pl.BlockSpec((OUT_FEATURES, 1), lambda i: (0, 0)),              # resident fused bias
        ],
        out_specs=pl.BlockSpec((OUT_FEATURES, tb), lambda i: (0, i)),       # lane-dense output
        compiler_params=pltpu.CompilerParams(
            dimension_semantics=("parallel",),
            vmem_limit_bytes=32 * 1024 * 1024,
        ),
        cost_estimate=cost,
    )(x, wt_eff, b_col)

    return out_t.T                                              # (B, 2)


def init_params(key):
    """Deterministic init mimicking PyTorch Linear default (uniform +-1/sqrt(fan_in))."""
    k1, k2, k3, k4 = jax.random.split(key, 4)
    bound1 = 1.0 / (IN_FEATURES ** 0.5)
    bound2 = 1.0 / (HIDDEN ** 0.5)
    w1 = jax.random.uniform(k1, (HIDDEN, IN_FEATURES), jnp.float32, -bound1, bound1)
    b1 = jax.random.uniform(k2, (HIDDEN,), jnp.float32, -bound1, bound1)
    w2 = jax.random.uniform(k3, (OUT_FEATURES, HIDDEN), jnp.float32, -bound2, bound2)
    b2 = jax.random.uniform(k4, (OUT_FEATURES,), jnp.float32, -bound2, bound2)
    return w1, b1, w2, b2


if __name__ == "__main__":
    key = jax.random.PRNGKey(0)
    kx, kp = jax.random.split(key)
    w1, b1, w2, b2 = init_params(kp)

    def ref_forward(x):
        # Exact two-step PyTorch-style forward in plain JAX (f32).
        return (x @ w1.T + b1) @ w2.T + b2

    def check(x):
        out = jax.block_until_ready(mlp_forward(x, w1, b1, w2, b2))
        ref = ref_forward(x)
        assert out.shape == ref.shape, (out.shape, ref.shape)
        assert jnp.allclose(out, ref, atol=1e-3, rtol=1e-3), (
            f"max abs err {jnp.max(jnp.abs(out - ref))}"
        )
        return out

    # 1) Tiny batch (module-spec scale): plain-XLA fast path.
    x_small = jax.random.normal(kx, (6, IN_FEATURES), dtype=jnp.float32)
    check(x_small)

    # 2) Moderate batch through the Pallas kernel: tb=256, 2-block grid with a
    #    ragged last block (384 % 256 != 0) -> exercises masked tail writes.
    x_mid = jax.random.normal(jax.random.PRNGKey(1), (384, IN_FEATURES), dtype=jnp.float32)
    check(x_mid)

    # 3) Larger batch, B % tb != 0 again (tb=1536, grid=2, ragged tail).
    x_big = jax.random.normal(jax.random.PRNGKey(2), (3000, IN_FEATURES), dtype=jnp.float32)
    check(x_big)

    print("KERNEL_OK")
</pallas_src>

<mosaic_0001>
module attributes {stable_mosaic.version = 11 : i64} {
  func.func @fused_linear_kernel(%arg0: i32, %arg1: memref<256x200xf32, #tpu.memory_space<vmem>>, %arg2: memref<2x200xf32, #tpu.memory_space<vmem>>, %arg3: memref<2x1xf32, #tpu.memory_space<vmem>>, %arg4: memref<2x256xf32, #tpu.memory_space<vmem>>) attributes {dimension_semantics = [#tpu.dimension_semantics<parallel>], iteration_bounds = array<i64: 2>, scalar_prefetch = 0 : i64, scratch_operands = 0 : i64, tpu.core_type = #tpu.core_type<tc>, window_params = [{transform_indices = @transform_0, window_bounds = array<i64: 256, 200>}, {pipeline_mode = #tpu.pipeline_mode<synchronous>, transform_indices = @transform_1, window_bounds = array<i64: 2, 200>}, {pipeline_mode = #tpu.pipeline_mode<synchronous>, transform_indices = @transform_2, window_bounds = array<i64: 2, 1>}, {transform_indices = @transform_3, window_bounds = array<i64: 2, 256>}]} {
    %c0 = arith.constant 0 : index
    %c0_0 = arith.constant 0 : index
    %0 = vector.load %arg2[%c0, %c0_0] : memref<2x200xf32, #tpu.memory_space<vmem>>, vector<2x200xf32>
    %c0_1 = arith.constant 0 : index
    %c0_2 = arith.constant 0 : index
    %1 = vector.load %arg1[%c0_1, %c0_2] : memref<256x200xf32, #tpu.memory_space<vmem>>, vector<256x200xf32>
    %cst = arith.constant dense<0.000000e+00> : vector<2x256xf32>
    %2 = tpu.matmul %0, %1, %cst {dimension_numbers = #tpu.dot_dimension_numbers<[1], [1], [0], [0], [0, 0, 1, 0], [], []>} : vector<2x200xf32>, vector<256x200xf32>, vector<2x256xf32> -> vector<2x256xf32>
    %c0_3 = arith.constant 0 : index
    %c0_4 = arith.constant 0 : index
    %3 = vector.load %arg3[%c0_3, %c0_4] : memref<2x1xf32, #tpu.memory_space<vmem>>, vector<2x1xf32>
    %4 = vector.broadcast %3 : vector<2x1xf32> to vector<2x256xf32>
    %5 = arith.addf %2, %4 : vector<2x256xf32>
    %c0_5 = arith.constant 0 : index
    %c0_6 = arith.constant 0 : index
    %6 = vector.load %arg4[%c0_5, %c0_6] : memref<2x256xf32, #tpu.memory_space<vmem>>, vector<2x256xf32>
    tpu.vector_store %arg4[%c0_5, %c0_6], %5 {strides = array<i32>} : memref<2x256xf32, #tpu.memory_space<vmem>>, vector<2x256xf32>,
    return
  }
  func.func @transform_0(%arg0: i32) -> (i32, i32) {
    %c0_i32 = arith.constant 0 : i32
    %c0_i32_0 = arith.constant 0 : i32
    return %arg0, %c0_i32 : i32, i32
  }
  func.func @transform_1(%arg0: i32) -> (i32, i32) {
    %c0_i32 = arith.constant 0 : i32
    %c0_i32_0 = arith.constant 0 : i32
    %c0_i32_1 = arith.constant 0 : i32
    return %c0_i32, %c0_i32_0 : i32, i32
  }
  func.func @transform_2(%arg0: i32) -> (i32, i32) {
    %c0_i32 = arith.constant 0 : i32
    %c0_i32_0 = arith.constant 0 : i32
    %c0_i32_1 = arith.constant 0 : i32
    return %c0_i32, %c0_i32_0 : i32, i32
  }
  func.func @transform_3(%arg0: i32) -> (i32, i32) {
    %c0_i32 = arith.constant 0 : i32
    %c0_i32_0 = arith.constant 0 : i32
    return %c0_i32, %arg0 : i32, i32
  }
}

</mosaic_0001>

<bundles_post_ra>
// kernel: tpu_custom_call.1
= control target key start
LH: loop header
LB: loop body
LE: loop exit
PB: predicated region body
PF: predicated region fallthrough
CT: control target
= control target key end

     0   :  { %8 = vsyncpa [#allocation3], 0  ;;  %s935_s0 = inlined_call_operand.vmem [shape: f32[384,200], index: 0, kind: input, shape index: {}]   ;;  %s936_s1 = inlined_call_operand.vmem [shape: f32[2,200], index: 1, kind: input, shape index: {}]   ;;  %s937_s2 = inlined_call_operand.vmem [shape: f32[2,1], index: 2, kind: input, shape index: {}]   ;;  %s938_s3 = inlined_call_operand.hbm [shape: f32[2,384], index: 3, kind: output, shape index: {}]  }
   0x1   :  { %10 = vsyncpa [#allocation3 + $0x1], 0  ;;  %s725_s12 = smov 0   ;;  %s727_s13 = smov 0  }
   0x2   :  { %s729_s14 = smov 0   ;;  %s731_s15 = smov 0  }
   0x3 LB: > { %s746_s16 = sadd.s32 4294967295, %s701_s15   ;;  %s547_s17 = sadd.s32 4294967294, %s701_s15   ;;  %s701_s15 = sphi %s731_s15, %s944_s15   ;;  %s697_s14 = sphi %s729_s14, %s943_s14   ;;  %s693_s13 = sphi %s727_s13, %s942_s13   ;;  %s689_s12 = sphi %s725_s12, %s941_s12  }
   0x4   : > { %s750_s18 = sadd.s32 1, %s701_s15   ;;  %s91_s19 = sadd.s32 1, %s697_s14 }
   0x5   : > { %s88_s20 = ssub.s32 %s701_s15, %s750_s18  ;;  %p101_p0 = scmp.ne.s32.totalorder %s697_s14, %s693_s13 }
   0x6   : > { %p89_p1 = scmp.eq.s32.totalorder %s88_s20, 0  ;;  %p102_p2 = scmp.eq.s32.totalorder %s746_s16, 1 }
   0x7   : > { %p107_p3 = scmp.ne.s32.totalorder %s693_s13, %s689_s12  ;;  %p108_p4 = scmp.eq.s32.totalorder %s547_s17, 1 }
   0x8   : > { %s761_s21 = scalar_select %p89_p1, %s697_s14, %s91_s19  }
   0x9   : > { %p763_p5 = por %p102_p2, %p101_p0  ;;  %p767_p6 = por %p108_p4, %p107_p3 }
   0xa   : > { %p550_p7 = scmp.ge.s32.totalorder %s701_s15, 1  ;;  %p152_p8 = scmp.lt.s32.totalorder %s701_s15, 3 }
   0xc   : > { %p153_p9 = pnand %p550_p7, %p152_p8 }
   0xd   : > { %s552_s24 = sshll.u32 (!%p153_p9), %s746_s16, 5  ;;  %s179_s6 = sand.u32 (!%p153_p9), 1, %s693_s13  }
   0xe   : > { %156 = sbr.rel (%p153_p9) target bundleno = 377 (0x179), region = 32  ;;  %p188_p10 = scmp.lt.s32.totalorder (!%p153_p9), %s552_s24, 47 }
   0xf   : > { %s551_s7 = sshll.u32 (!%p153_p9), %s179_s6, 2  ;;  %s888_s9 = scalar_lea.sflag (!%p153_p9), [#allocation3], %s179_s6 }
  0x10   : > { %s181_s8 = scalar_lea.vmem (!%p153_p9), [#allocation2], %s551_s7 }
  0x13   : > { %s946_s24 = smov (!%p188_p10, %s552_s24), 47  ;;  %v777_v0 = vld.sshfl [vmem:[%s936_s1] sm:$0x33 pattern:$0x76325410]  ;;  %vm285_vm0 = vcmask 588800  }
  0x14   : > { %s599_s27 = sshll.u32 %s946_s24, 4  ;;  %v283_v1 = vcombine.high %v777_v0, %v777_v0  ;;  %v703_v5 = vmov 0   ;;  %v269_v16 = vld [vmem:[%s937_s2] sm:$0x3]  ;;  %s591_s10 = sshll.u32 (%p763_p5), %s746_s16, 1 }
  0x15   : > { %s784_s30 = scalar_lea.vmem %s935_s0, %s599_s27  ;;  %640 = vset.pattern.permute.xlu0 %v703_v5  ;;  %s476_s11 = ssub.s32 (%p763_p5), 3, %s591_s10 }
  0x16   : > { %v236_v2 = vld [vmem:[%s784_s30 + $0xf8] sm:$0xff]  ;;  %v235_v3 = vld [vmem:[%s784_s30 + $0xf0] sm:$0xff]  ;;  %v234_v4 = vld [vmem:[%s784_s30 + $0xe8] sm:$0xff]  ;;  %588 = vmatprep.mubr.msk.f32.mxu0 %vm285_vm0, %v283_v1  ;;  %272 = vperm.xlu0 %640, %v269_v16   ;;  %p477_p11 = scmp.lt.s32.totalorder (%p763_p5), %s476_s11, 2 }
  0x17   : > { %556 = vmatprep.subr.msk.mxu0 %vm285_vm0, %v236_v2  ;;  %v233_v6 = vld [vmem:[%s784_s30 + $0xe0] sm:$0xff]  ;;  %v232_v7 = vld [vmem:[%s784_s30 + $0xd8] sm:$0xff]  ;;  %v231_v8 = vld [vmem:[%s784_s30 + $0xd0] sm:$0xff] }
  0x18   : > { %385 = vmatpush1.xpose.msra.mxu0 %v235_v3  ;;  %v230_v9 = vld [vmem:[%s784_s30 + $0xc8] sm:$0xff]  ;;  %v229_v10 = vld [vmem:[%s784_s30 + $0xc0] sm:$0xff]  ;;  %v228_v11 = vld [vmem:[%s784_s30 + $0xb8] sm:$0xff] }
  0x19   : > { %557 = vmatprep.subr.msk.mxu0 %vm285_vm0, %v234_v4  ;;  %v227_v12 = vld [vmem:[%s784_s30 + $0xb0] sm:$0xff]  ;;  %v226_v13 = vld [vmem:[%s784_s30 + $0xa8] sm:$0xff]  ;;  %v225_v14 = vld [vmem:[%s784_s30 + $0xa0] sm:$0xff] }
  0x1a   : > { %v224_v15 = vld [vmem:[%s784_s30 + $0x98] sm:$0xff]  ;;  %v223_v17 = vld [vmem:[%s784_s30 + $0x90] sm:$0xff]  ;;  %v222_v18 = vld [vmem:[%s784_s30 + $0x88] sm:$0xff] }
  0x1b   : > { %v221_v19 = vld [vmem:[%s784_s30 + $0x80] sm:$0xff]  ;;  %v220_v20 = vld [vmem:[%s784_s30 + $0x78] sm:$0xff]  ;;  %v219_v21 = vld [vmem:[%s784_s30 + $0x70] sm:$0xff] }
  0x1c   : > { %387 = vmatpush1.xpose.msra.mxu0 %v233_v6  ;;  %v218_v22 = vld [vmem:[%s784_s30 + $0x68] sm:$0xff]  ;;  %v217_v23 = vld [vmem:[%s784_s30 + $0x60] sm:$0xff]  ;;  %v216_v24 = vld [vmem:[%s784_s30 + $0x58] sm:$0xff] }
  0x1d   : > { %558 = vmatprep.subr.msk.mxu0 %vm285_vm0, %v232_v7  ;;  %v215_v25 = vld [vmem:[%s784_s30 + $0x50] sm:$0xff]  ;;  %v214_v26 = vld [vmem:[%s784_s30 + $0x48] sm:$0xff]  ;;  %v213_v27 = vld [vmem:[%s784_s30 + $0x40] sm:$0xff] }
  0x1e   : > { %v212_v28 = vld [vmem:[%s784_s30 + $0x38] sm:$0xff]  ;;  %v211_v29 = vld [vmem:[%s784_s30 + $0x30] sm:$0xff]  ;;  %v210_v30 = vld [vmem:[%s784_s30 + $0x28] sm:$0xff] }
  0x1f   : > { %v209_v31 = vld [vmem:[%s784_s30 + $0x20] sm:$0xff]  ;;  %v208_v32 = vld [vmem:[%s784_s30 + $0x18] sm:$0xff]  ;;  %v207_v33 = vld [vmem:[%s784_s30 + $0x10] sm:$0xff] }
  0x20   : > { %389 = vmatpush1.xpose.msra.mxu0 %v231_v8  ;;  %v206_v34 = vld [vmem:[%s784_s30 + $0x8] sm:$0xff]  ;;  %v205_v35 = vld [vmem:[%s784_s30] sm:$0xff]  ;;  %v268_v36 = vld [vmem:[%s784_s30 + $0x1f8] sm:$0xff] }
  0x21   : > { %559 = vmatprep.subr.msk.mxu0 %vm285_vm0, %v230_v9  ;;  %v267_v37 = vld [vmem:[%s784_s30 + $0x1f0] sm:$0xff]  ;;  %v266_v38 = vld [vmem:[%s784_s30 + $0x1e8] sm:$0xff]  ;;  %v265_v39 = vld [vmem:[%s784_s30 + $0x1e0] sm:$0xff] }
  0x22   : > { %v264_v40 = vld [vmem:[%s784_s30 + $0x1d8] sm:$0xff]  ;;  %v263_v41 = vld [vmem:[%s784_s30 + $0x1d0] sm:$0xff]  ;;  %v262_v42 = vld [vmem:[%s784_s30 + $0x1c8] sm:$0xff] }
  0x23   : > { %v261_v43 = vld [vmem:[%s784_s30 + $0x1c0] sm:$0xff]  ;;  %v260_v44 = vld [vmem:[%s784_s30 + $0x1b8] sm:$0xff]  ;;  %v259_v45 = vld [vmem:[%s784_s30 + $0x1b0] sm:$0xff] }
  0x24   : > { %391 = vmatpush1.xpose.msra.mxu0 %v229_v10  ;;  %v258_v46 = vld [vmem:[%s784_s30 + $0x1a8] sm:$0xff]  ;;  %v257_v47 = vld [vmem:[%s784_s30 + $0x1a0] sm:$0xff]  ;;  %v256_v48 = vld [vmem:[%s784_s30 + $0x198] sm:$0xff] }
  0x25   : > { %560 = vmatprep.subr.msk.mxu0 %vm285_vm0, %v228_v11  ;;  %v255_v49 = vld [vmem:[%s784_s30 + $0x190] sm:$0xff]  ;;  %v254_v50 = vld [vmem:[%s784_s30 + $0x188] sm:$0xff]  ;;  %v253_v51 = vld [vmem:[%s784_s30 + $0x180] sm:$0xff] }
  0x26   : > { %v252_v52 = vld [vmem:[%s784_s30 + $0x178] sm:$0xff]  ;;  %v251_v53 = vld [vmem:[%s784_s30 + $0x170] sm:$0xff]  ;;  %v250_v54 = vld [vmem:[%s784_s30 + $0x168] sm:$0xff] }
  0x27   : > { %v249_v55 = vld [vmem:[%s784_s30 + $0x160] sm:$0xff]  ;;  %v248_v56 = vld [vmem:[%s784_s30 + $0x158] sm:$0xff]  ;;  %v247_v57 = vld [vmem:[%s784_s30 + $0x150] sm:$0xff] }
  0x28   : > { %393 = vmatpush1.xpose.msra.mxu0 %v227_v12  ;;  %v246_v58 = vld [vmem:[%s784_s30 + $0x148] sm:$0xff]  ;;  %v245_v59 = vld [vmem:[%s784_s30 + $0x140] sm:$0xff]  ;;  %v244_v60 = vld [vmem:[%s784_s30 + $0x138] sm:$0xff] }
  0x29   : > { %561 = vmatprep.subr.msk.mxu0 %vm285_vm0, %v226_v13  ;;  %v243_v61 = vld [vmem:[%s784_s30 + $0x130] sm:$0xff]  ;;  %v242_v62 = vld [vmem:[%s784_s30 + $0x128] sm:$0xff]  ;;  %v241_v63 = vld [vmem:[%s784_s30 + $0x120] sm:$0xff] }
  0x2a   : > { %v240_v1 = vld [vmem:[%s784_s30 + $0x118] sm:$0xff]  ;;  %v239_v2 = vld [vmem:[%s784_s30 + $0x110] sm:$0xff]  ;;  %v238_v3 = vld [vmem:[%s784_s30 + $0x108] sm:$0xff] }
  0x2b   : > { %v237_v4 = vld [vmem:[%s784_s30 + $0x100] sm:$0xff] }
  0x2c   : > { %395 = vmatpush1.xpose.msra.mxu0 %v225_v14 }
  0x2d   : > { %562 = vmatprep.subr.msk.mxu0 %vm285_vm0, %v224_v15 }
  0x30   : > { %397 = vmatpush1.xpose.msra.mxu0 %v223_v17 }
  0x31   : > { %563 = vmatprep.subr.msk.mxu0 %vm285_vm0, %v222_v18 }
  0x34   : > { %399 = vmatpush1.xpose.msra.mxu0 %v221_v19 }
  0x35   : > { %564 = vmatprep.subr.msk.mxu0 %vm285_vm0, %v220_v20 }
  0x38   : > { %401 = vmatpush1.xpose.msra.mxu0 %v219_v21 }
  0x39   : > { %565 = vmatprep.subr.msk.mxu0 %vm285_vm0, %v218_v22 }
  0x3c   : > { %403 = vmatpush1.xpose.msra.mxu0 %v217_v23 }
  0x3d   : > { %566 = vmatprep.subr.msk.mxu0 %vm285_vm0, %v216_v24 }
  0x40   : > { %405 = vmatpush1.xpose.msra.mxu0 %v215_v25 }
  0x41   : > { %567 = vmatprep.subr.msk.mxu0 %vm285_vm0, %v214_v26 }
  0x44   : > { %407 = vmatpush1.xpose.msra.mxu0 %v213_v27 }
  0x45   : > { %568 = vmatprep.subr.msk.mxu0 %vm285_vm0, %v212_v28 }
  0x48   : > { %409 = vmatpush1.xpose.msra.mxu0 %v211_v29 }
  0x49   : > { %569 = vmatprep.subr.msk.mxu0 %vm285_vm0, %v210_v30 }
  0x4c   : > { %411 = vmatpush1.xpose.msra.mxu0 %v209_v31 }
  0x4d   : > { %570 = vmatprep.subr.msk.mxu0 %vm285_vm0, %v208_v32 }
  0x50   : > { %413 = vmatpush1.xpose.msra.mxu0 %v207_v33 }
  0x51   : > { %571 = vmatprep.subr.msk.mxu0 %vm285_vm0, %v206_v34 }
  0x54   : > { %415 = vmatpush1.xpose.msra.mxu0 %v205_v35 }
  0x55   : > { %572 = vmatprep.subr.msk.mxu0 %vm285_vm0, %v268_v36 }
  0x58   : > { %417 = vmatpush2.xpose.msra.mxu0 %v267_v37 }
  0x59   : > { %573 = vmatprep.subr.msk.mxu0 %vm285_vm0, %v266_v38 }
  0x5c   : > { %419 = vmatpush2.xpose.msra.mxu0 %v265_v39 }
  0x5d   : > { %574 = vmatprep.subr.msk.mxu0 %vm285_vm0, %v264_v40 }
  0x60   : > { %421 = vmatpush2.xpose.msra.mxu0 %v263_v41 }
  0x61   : > { %575 = vmatprep.subr.msk.mxu0 %vm285_vm0, %v262_v42 }
  0x64   : > { %423 = vmatpush2.xpose.msra.mxu0 %v261_v43 }
  0x65   : > { %576 = vmatprep.subr.msk.mxu0 %vm285_vm0, %v260_v44 }
  0x68   : > { %425 = vmatpush2.xpose.msra.mxu0 %v259_v45 }
  0x69   : > { %577 = vmatprep.subr.msk.mxu0 %vm285_vm0, %v258_v46 }
  0x6c   : > { %427 = vmatpush2.xpose.msra.mxu0 %v257_v47 }
  0x6d   : > { %578 = vmatprep.subr.msk.mxu0 %vm285_vm0, %v256_v48 }
  0x70   : > { %429 = vmatpush2.xpose.msra.mxu0 %v255_v49 }
  0x71   : > { %579 = vmatprep.subr.msk.mxu0 %vm285_vm0, %v254_v50 }
  0x74   : > { %431 = vmatpush2.xpose.msra.mxu0 %v253_v51 }
  0x75   : > { %580 = vmatprep.subr.msk.mxu0 %vm285_vm0, %v252_v52 }
  0x78   : > { %433 = vmatpush2.xpose.msra.mxu0 %v251_v53 }
  0x79   : > { %581 = vmatprep.subr.msk.mxu0 %vm285_vm0, %v250_v54 }
  0x7c   : > { %435 = vmatpush2.xpose.msra.mxu0 %v249_v55 }
  0x7d   : > { %582 = vmatprep.subr.msk.mxu0 %vm285_vm0, %v248_v56 }
  0x80   : > { %437 = vmatpush2.xpose.msra.mxu0 %v247_v57 }
  0x81   : > { %583 = vmatprep.subr.msk.mxu0 %vm285_vm0, %v246_v58 }
  0x84   : > { %439 = vmatpush2.xpose.msra.mxu0 %v245_v59 }
  0x85   : > { %584 = vmatprep.subr.msk.mxu0 %vm285_vm0, %v244_v60 }
  0x88   : > { %441 = vmatpush2.xpose.msra.mxu0 %v243_v61 }
  0x89   : > { %585 = vmatprep.subr.msk.mxu0 %vm285_vm0, %v242_v62 }
  0x8c   : > { %443 = vmatpush2.xpose.msra.mxu0 %v241_v63 }
  0x8d   : > { %586 = vmatprep.subr.msk.mxu0 %vm285_vm0, %v240_v1 }
  0x90   : > { %445 = vmatpush2.xpose.msra.mxu0 %v239_v2 }
  0x91   : > { %587 = vmatprep.subr.msk.mxu0 %vm285_vm0, %v238_v3  ;;  %v273_v5 = vpop.permute.xlu0 %272 }
  0x94   : > { %447 = vmatpush2.xpose.msra.mxu0 %v237_v4 }
  0x97   : > { %449 = vmatmul.mubr.f32.vlgmr.msra.gmra.mxu0 %v777_v0 }
 0x157   : > { %v450_v6 = vpop.f32.mrf.mxu0 }
 0x158   : > { %v451_v8 = vadd.f32 %v450_v6, %v273_v5 }
 0x159   : > { %v452_v7 = vpop.f32.mrf.mxu0 }
 0x15a   : > { %v453_v9 = vadd.f32 %v452_v7, %v273_v5  ;;  %474 = sbr.rel (!%p763_p5) target bundleno = 377 (0x179), region = 36 }
 0x15c   : > { %v457_v10 = vcombine.low %v451_v8, %v453_v9 }
 0x15e   : > { %589 = vst.sshfl [vmem:[%s181_s8] sm:$0x33 pattern:$0x76325410] %v457_v10 }
 0x15f   : > { %s948_s11 = smov (!%p477_p11, %s476_s11), 2 }
 0x160   : > { %s893_s17 = sshll.u32 %s948_s11, 5 }
 0x161   : > { %s481_s19 = ssub.s32 64, %s893_s17 }
 0x162   : > { %482 = vsyncadd %s888_s9, %s481_s19  ;;  %p593_p12 = scmp.ne.s32.totalorder %s893_s17, 0  ;;  %s600_s20 = sshll.u32 %s746_s16, 6 }
 0x163   : > { %s485_s25 = scalar_lea.hbm %s938_s3, %s600_s20  ;;  %s488_s26 = sshll.u32 %s181_s8, 4  ;;  %s489_s26 = int_to_ptr.vmem [resolvable:$true] %s488_s26 }
 0x164   : > { %s641_s27 = scalar_lea.vmem %s489_s26, %s893_s17  ;;  %s704_s28 = smov [#allocation2]  }
 0x165   : > { %p642_p13 = scmp.ne.s32.totalorder %s489_s26, %s641_s27  ;;  %s645_s29 = sshll.u32 %s704_s28, 4  ;;  %s646_s29 = int_to_ptr.vmem [resolvable:$false] %s645_s29 }
 0x166   : > { %s647_s30 = scalar_lea.vmem %s646_s29, 128  ;;  %p648_p2 = scmp.lt.s32.totalorder %s489_s26, %s646_s29 }
 0x167   : > { %p643_p0 = pnand %p642_p13, %p593_p12  ;;  %p649_p3 = scmp.lt.s32.totalorder %s647_s30, %s641_s27 }
 0x169   : > { %p644_p1 = pneg %p643_p0  ;;  %p650_p4 = por %p649_p3, %p648_p2 }
 0x16b   : > { %p651_p5 = pnand %p650_p4, %p644_p1 }
 0x16d   : > { %654 = shalt.err (!%p651_p5)
}
 0x16e   : > { %s655_s16 = scalar_lea.hbm %s485_s25, %s893_s17  ;;  %s659_s6 = scalar_lea.hbm %s938_s3, 96 }
 0x16f   : > { %p656_p7 = scmp.ne.s32.totalorder %s485_s25, %s655_s16  ;;  %p660_p10 = scmp.lt.s32.totalorder %s485_s25, %s938_s3 }
 0x170   : > { %p661_p11 = scmp.lt.s32.totalorder %s659_s6, %s655_s16 }
 0x171   : > { %p657_p8 = pnand %p656_p7, %p593_p12 }
 0x172   : > { %p662_p13 = por %p661_p11, %p660_p10 }
 0x173   : > { %p658_p9 = pneg %p657_p8 }
 0x175   : > { %p663_p0 = pnand %p662_p13, %p658_p9 }
 0x177   : > { %666 = shalt.err (!%p663_p0)
}
 0x178   : > { %491 = dma.vmem_to_hbm [thread:$0]  (%p593_p12), %s489_s26, %s893_s17, %s485_s25, %s888_s9  }
 0x179 PF: > { %p606_p1 = scmp.ge.s32.totalorder %s701_s15, 2  ;;  %s500_s10 = sand.u32 1, %s689_s12  }
 0x17a   : > { %s501_s11 = scalar_lea.sflag [#allocation3], %s500_s10 }
 0x17b   : > { %p603_p2 = pnand %p606_p1, %p767_p6 }
 0x17d   : > { %p604_p3 = pneg %p603_p2 }
 0x17f   : > { %684 = dma.done.wait (%p604_p3), %s501_s11, 64  }
 0x180   : > { %686 = vsyncadd (%p604_p3), %s501_s11, 4294967232  ;;  %p13_p4 = scmp.ge.s32.totalorder %s750_s18, 4   ;;  %s941_s12 = smov %s693_s13 }
 0x181   : > { %s942_s13 = smov %s697_s14  ;;  %s943_s14 = smov %s761_s21 }
 0x182   : > { %s944_s15 = smov %s750_s18  ;;  %15 = sbr.rel (!%p13_p4) target bundleno = 3 (0x3), region = 67 }
 0x187   :  { %506 = vsyncpa [#allocation3], 1 }
 0x188   :  { %508 = vsyncpa [#allocation3 + $0x1], 1 }

</bundles_post_ra>
